<compile_context>
chip_gen: v6e
topology: v6e:2x2x1
jax: 0.10.0
libtpu: 0.0.40
codegen_flags: <defaults>
</compile_context>

<pallas_src>
import jax
import jax.numpy as jnp
from jax.experimental import pallas as pl
from jax.experimental.pallas import tpu as pltpu

SELU_SCALE = 1.0507009873554805
SELU_ALPHA = 1.6732632423543772

LANE = 128     # vreg lane width: pad every matmul minor dim to this
SUBLANE = 8    # f32 sublane height: pad batch to a multiple of this


def _round_up(v, m):
    return ((v + m - 1) // m) * m


def _selu(x):
    return SELU_SCALE * jnp.where(x > 0, x, SELU_ALPHA * (jnp.exp(x) - 1.0))


# --------------------------------------------------------------------------
# Pallas kernel / call builder
# --------------------------------------------------------------------------
def _make_call(n_hidden, padded_dims, enc_pad, head_pad, batch_pad, batch_tile):
    """pallas_call for the fully padded, fused-head encoder."""
    n_steps = batch_pad // batch_tile

    def kernel(*refs):
        x_ref = refs[0]
        w_hidden = refs[1:1 + n_hidden]
        w_enc, b_enc, w_head, b_head = refs[1 + n_hidden:5 + n_hidden]
        out_ref = refs[5 + n_hidden]

        h = x_ref[...]                                        # bf16 operand
        # SNN hidden stack: Linear(no bias) -> SELU (AlphaDropout = identity at eval).
        for w in w_hidden:
            z = jnp.dot(h, w[...], preferred_element_type=jnp.float32)
            h = _selu(z).astype(jnp.bfloat16)                 # f32 math, bf16 at matmul edge
        # Final SNN linear (bias) + encoder Tanh.
        z = jnp.dot(h, w_enc[...], preferred_element_type=jnp.float32) + b_enc[...]
        h = jnp.tanh(z).astype(jnp.bfloat16)
        # Fused [mu | logvar] head: one lane-dense matmul + one unmasked store.
        out_ref[...] = (
            jnp.dot(h, w_head[...], preferred_element_type=jnp.float32) + b_head[...])

    # Weights are constant across the batch grid; single-buffer them when the
    # grid actually iterates (halves their VMEM footprint; moot at grid=(1,)).
    weight_kwargs = {}
    if n_steps > 1:
        weight_kwargs = dict(pipeline_mode=pl.Buffered(1))

    def wspec(shape):
        return pl.BlockSpec(shape, lambda i: (0, 0), **weight_kwargs)

    in_specs = [pl.BlockSpec((batch_tile, padded_dims[0]), lambda i: (i, 0))]
    for li in range(n_hidden):
        in_specs.append(wspec((padded_dims[li], padded_dims[li + 1])))
    in_specs += [
        wspec((padded_dims[-1], enc_pad)),   # w_enc   (bf16)
        wspec((1, enc_pad)),                 # b_enc   (f32)
        wspec((enc_pad, head_pad)),          # w_mu|w_var fused (bf16)
        wspec((1, head_pad)),                # b_mu|b_var fused (f32)
    ]
    out_specs = pl.BlockSpec((batch_tile, head_pad), lambda i: (i, 0))
    out_shape = jax.ShapeDtypeStruct((batch_pad, head_pad), jnp.float32)

    # Advisory cost estimate so XLA schedules this tiny custom call sensibly.
    mm = list(zip(padded_dims[:-1], padded_dims[1:])) + \
         [(padded_dims[-1], enc_pad), (enc_pad, head_pad)]
    flops = 2 * batch_pad * sum(k * n for k, n in mm)
    transcendentals = batch_pad * (sum(padded_dims[1:]) + enc_pad)
    bytes_accessed = (2 * batch_pad * padded_dims[0]          # bf16 x
                      + 2 * sum(k * n for k, n in mm)         # bf16 weights
                      + 4 * (enc_pad + head_pad)              # f32 biases
                      + 4 * batch_pad * head_pad)             # f32 output

    return pl.pallas_call(
        kernel,
        out_shape=out_shape,
        grid_spec=pl.GridSpec(
            grid=(n_steps,),
            in_specs=in_specs,
            out_specs=out_specs,
        ),
        compiler_params=pltpu.CompilerParams(
            dimension_semantics=("parallel",)),
        cost_estimate=pl.CostEstimate(
            flops=flops,
            transcendentals=transcendentals,
            bytes_accessed=bytes_accessed),
    )


# --------------------------------------------------------------------------
# Parameter packing (pad to lane multiples, fuse heads, cast weights to bf16)
# --------------------------------------------------------------------------
def _pad2(a, rows, cols, dtype):
    out = jnp.zeros((rows, cols), dtype)
    return out.at[:a.shape[0], :a.shape[1]].set(a.astype(dtype))


def pack_params(params, input_dim, hidden_dims, encoding_dim, latent_dim):
    dims = [input_dim] + list(hidden_dims)
    padded_dims = [_round_up(d, LANE) for d in dims]
    enc_pad = _round_up(encoding_dim, LANE)
    head_pad = _round_up(2 * latent_dim, LANE)

    packed = []
    for li, w in enumerate(params["w_hidden"]):
        packed.append(_pad2(w, padded_dims[li], padded_dims[li + 1], jnp.bfloat16))
    w_enc = _pad2(params["w_enc"], padded_dims[-1], enc_pad, jnp.bfloat16)
    b_enc = _pad2(params["b_enc"], 1, enc_pad, jnp.float32)
    w_head = jnp.concatenate([params["w_mu"], params["w_var"]], axis=1)
    b_head = jnp.concatenate([params["b_mu"], params["b_var"]], axis=1)
    w_head = _pad2(w_head, enc_pad, head_pad, jnp.bfloat16)
    b_head = _pad2(b_head, 1, head_pad, jnp.float32)

    flat = packed + [w_enc, b_enc, w_head, b_head]
    return flat, padded_dims, enc_pad, head_pad


def vae_encoder_pallas(x, params, input_dim, hidden_dims, encoding_dim,
                       latent_dim, batch_tile=None):
    """Runs the Pallas encoder; returns (mu, logvar) with original shapes."""
    batch = x.shape[0]
    batch_pad = _round_up(batch, SUBLANE)
    if batch_tile is None:
        batch_tile = batch_pad            # whole batch in a single grid step
    batch_pad = _round_up(batch_pad, batch_tile)

    flat, padded_dims, enc_pad, head_pad = pack_params(
        params, input_dim, hidden_dims, encoding_dim, latent_dim)

    x_p = _pad2(x, batch_pad, padded_dims[0], jnp.bfloat16)

    call = _make_call(len(hidden_dims), padded_dims, enc_pad, head_pad,
                      batch_pad, batch_tile)
    out = call(x_p, *flat)
    mu = out[:batch, :latent_dim]
    logvar = out[:batch, latent_dim:2 * latent_dim]
    return mu, logvar


# --------------------------------------------------------------------------
# Init + reference
# --------------------------------------------------------------------------
def init_params(key, input_dim, hidden_dims, encoding_dim, latent_dim):
    """Mirrors the module's reset_parameters / torch defaults.

    SNN linears: weight ~ Normal(0, 1/sqrt(out_features)); final SNN bias
    ~ U(-1/sqrt(fan_in), 1/sqrt(fan_in)). fc_mu / fc_var use torch-default
    style uniform bound 1/sqrt(fan_in). Weights stored (in, out).
    """
    dims = [input_dim] + list(hidden_dims)
    keys = jax.random.split(key, 2 * len(hidden_dims) + 8)
    ki = iter(range(len(keys)))

    params = {}
    ws = []
    for li in range(len(hidden_dims)):
        fan_in, fan_out = dims[li], dims[li + 1]
        w = jax.random.normal(keys[next(ki)], (fan_in, fan_out),
                              jnp.float32) / jnp.sqrt(float(fan_out))
        ws.append(w)
    params["w_hidden"] = ws

    fan_in, fan_out = dims[-1], encoding_dim
    params["w_enc"] = jax.random.normal(
        keys[next(ki)], (fan_in, fan_out), jnp.float32) / jnp.sqrt(float(fan_out))
    bound = 1.0 / jnp.sqrt(float(fan_in))
    params["b_enc"] = jax.random.uniform(
        keys[next(ki)], (1, fan_out), jnp.float32, -bound, bound)

    for name in ("mu", "var"):
        fan_in, fan_out = encoding_dim, latent_dim
        bound = 1.0 / jnp.sqrt(float(fan_in))
        params[f"w_{name}"] = jax.random.uniform(
            keys[next(ki)], (fan_in, fan_out), jnp.float32, -bound, bound)
        params[f"b_{name}"] = jax.random.uniform(
            keys[next(ki)], (1, fan_out), jnp.float32, -bound, bound)
    return params


def vae_encoder_reference(x, params, matmul_dtype=jnp.float32):
    """Pure-JAX reference. matmul_dtype=f32 -> exact module math;
    matmul_dtype=bf16 -> same quantization as the kernel (f32 accumulation)."""
    cast = lambda a: a.astype(matmul_dtype)
    h = cast(x)
    for w in params["w_hidden"]:
        z = jnp.dot(h, cast(w), preferred_element_type=jnp.float32)
        h = cast(_selu(z))
    z = jnp.dot(h, cast(params["w_enc"]),
                preferred_element_type=jnp.float32) + params["b_enc"]
    h = cast(jnp.tanh(z))
    mu = jnp.dot(h, cast(params["w_mu"]),
                 preferred_element_type=jnp.float32) + params["b_mu"]
    logvar = jnp.dot(h, cast(params["w_var"]),
                     preferred_element_type=jnp.float32) + params["b_var"]
    return mu, logvar


# --------------------------------------------------------------------------
if __name__ == "__main__":
    # VAEencoder(input_dim=128, n_layers=4, encoding_space_dim=32,
    #            latent_space_dim=8, use_SNN=True, pow_2_decrease=False,
    #            use_latent_space_activation=False) at a small batch.
    input_dim = 128
    n_layers = 4
    encoding_dim = 32
    latent_dim = 8
    batch = 16

    # hidden_dims = [input_dim // n for n in 2..n_layers if input_dim//n > encoding_dim]
    hidden_dims = [input_dim // n for n in range(2, n_layers + 1)
                   if input_dim // n > encoding_dim]   # -> [64, 42]

    key = jax.random.PRNGKey(0)
    pkey, xkey = jax.random.split(key)
    params = init_params(pkey, input_dim, hidden_dims, encoding_dim, latent_dim)
    x = jax.random.normal(xkey, (batch, input_dim), jnp.float32)

    mu, logvar = vae_encoder_pallas(x, params, input_dim, hidden_dims,
                                    encoding_dim, latent_dim)
    mu = jax.block_until_ready(mu)
    logvar = jax.block_until_ready(logvar)
    assert mu.shape == (batch, latent_dim) and logvar.shape == (batch, latent_dim)

    # (1) kernel vs identically-quantized (bf16-operand, f32-accum) reference: tight.
    mu_q, logvar_q = vae_encoder_reference(x, params, matmul_dtype=jnp.bfloat16)
    assert jnp.allclose(mu, mu_q, atol=2e-3, rtol=2e-3)
    assert jnp.allclose(logvar, logvar_q, atol=2e-3, rtol=2e-3)

    # (2) kernel vs exact f32 module math: relaxed tolerance for bf16 operands.
    mu_f, logvar_f = vae_encoder_reference(x, params)
    assert jnp.allclose(mu, mu_f, atol=1e-1, rtol=1e-1)
    assert jnp.allclose(logvar, logvar_f, atol=1e-1, rtol=1e-1)

    print("KERNEL_OK")
</pallas_src>

<mosaic_0001>
module attributes {stable_mosaic.version = 11 : i64} {
  func.func @kernel(%arg0: i32, %arg1: memref<16x128xbf16, #tpu.memory_space<vmem>>, %arg2: memref<128x128xbf16, #tpu.memory_space<vmem>>, %arg3: memref<128x128xbf16, #tpu.memory_space<vmem>>, %arg4: memref<128x128xbf16, #tpu.memory_space<vmem>>, %arg5: memref<1x128xf32, #tpu.memory_space<vmem>>, %arg6: memref<128x128xbf16, #tpu.memory_space<vmem>>, %arg7: memref<1x128xf32, #tpu.memory_space<vmem>>, %arg8: memref<16x128xf32, #tpu.memory_space<vmem>>) attributes {dimension_semantics = [#tpu.dimension_semantics<parallel>], iteration_bounds = array<i64: 1>, scalar_prefetch = 0 : i64, scratch_operands = 0 : i64, tpu.core_type = #tpu.core_type<tc>, window_params = [{transform_indices = @transform_0, window_bounds = array<i64: 16, 128>}, {pipeline_mode = #tpu.pipeline_mode<synchronous>, transform_indices = @transform_1, window_bounds = array<i64: 128, 128>}, {pipeline_mode = #tpu.pipeline_mode<synchronous>, transform_indices = @transform_2, window_bounds = array<i64: 128, 128>}, {pipeline_mode = #tpu.pipeline_mode<synchronous>, transform_indices = @transform_3, window_bounds = array<i64: 128, 128>}, {pipeline_mode = #tpu.pipeline_mode<synchronous>, transform_indices = @transform_4, window_bounds = array<i64: 1, 128>}, {pipeline_mode = #tpu.pipeline_mode<synchronous>, transform_indices = @transform_5, window_bounds = array<i64: 128, 128>}, {pipeline_mode = #tpu.pipeline_mode<synchronous>, transform_indices = @transform_6, window_bounds = array<i64: 1, 128>}, {transform_indices = @transform_7, window_bounds = array<i64: 16, 128>}]} {
    %c0 = arith.constant 0 : index
    %c0_0 = arith.constant 0 : index
    %0 = vector.load %arg1[%c0, %c0_0] : memref<16x128xbf16, #tpu.memory_space<vmem>>, vector<16x128xbf16>
    %c0_1 = arith.constant 0 : index
    %c0_2 = arith.constant 0 : index
    %1 = vector.load %arg2[%c0_1, %c0_2] : memref<128x128xbf16, #tpu.memory_space<vmem>>, vector<128x128xbf16>
    %cst = arith.constant dense<0.000000e+00> : vector<16x128xf32>
    %2 = tpu.matmul %0, %1, %cst {dimension_numbers = #tpu.dot_dimension_numbers<[1], [0], [0], [1], [0, 0, 1, 1], [], []>} : vector<16x128xbf16>, vector<128x128xbf16>, vector<16x128xf32> -> vector<16x128xf32>
    %cst_3 = arith.constant 0.000000e+00 : f32
    %3 = vector.broadcast %cst_3 : f32 to vector<16x128xf32>
    %4 = arith.cmpf ogt, %2, %3 : vector<16x128xf32>
    %5 = math.exp %2 : vector<16x128xf32>
    %cst_4 = arith.constant 1.000000e+00 : f32
    %6 = vector.broadcast %cst_4 : f32 to vector<16x128xf32>
    %7 = arith.subf %5, %6 : vector<16x128xf32>
    %cst_5 = arith.constant 1.67326319 : f32
    %8 = vector.broadcast %cst_5 : f32 to vector<16x128xf32>
    %9 = arith.mulf %8, %7 : vector<16x128xf32>
    %10 = arith.select %4, %2, %9 : vector<16x128xi1>, vector<16x128xf32>
    %cst_6 = arith.constant 1.05070102 : f32
    %11 = vector.broadcast %cst_6 : f32 to vector<16x128xf32>
    %12 = arith.mulf %11, %10 : vector<16x128xf32>
    %13 = arith.truncf %12 : vector<16x128xf32> to vector<16x128xbf16>
    %c0_7 = arith.constant 0 : index
    %c0_8 = arith.constant 0 : index
    %14 = vector.load %arg3[%c0_7, %c0_8] : memref<128x128xbf16, #tpu.memory_space<vmem>>, vector<128x128xbf16>
    %cst_9 = arith.constant dense<0.000000e+00> : vector<16x128xf32>
    %15 = tpu.matmul %13, %14, %cst_9 {dimension_numbers = #tpu.dot_dimension_numbers<[1], [0], [0], [1], [0, 0, 1, 1], [], []>} : vector<16x128xbf16>, vector<128x128xbf16>, vector<16x128xf32> -> vector<16x128xf32>
    %cst_10 = arith.constant 0.000000e+00 : f32
    %16 = vector.broadcast %cst_10 : f32 to vector<16x128xf32>
    %17 = arith.cmpf ogt, %15, %16 : vector<16x128xf32>
    %18 = math.exp %15 : vector<16x128xf32>
    %cst_11 = arith.constant 1.000000e+00 : f32
    %19 = vector.broadcast %cst_11 : f32 to vector<16x128xf32>
    %20 = arith.subf %18, %19 : vector<16x128xf32>
    %cst_12 = arith.constant 1.67326319 : f32
    %21 = vector.broadcast %cst_12 : f32 to vector<16x128xf32>
    %22 = arith.mulf %21, %20 : vector<16x128xf32>
    %23 = arith.select %17, %15, %22 : vector<16x128xi1>, vector<16x128xf32>
    %cst_13 = arith.constant 1.05070102 : f32
    %24 = vector.broadcast %cst_13 : f32 to vector<16x128xf32>
    %25 = arith.mulf %24, %23 : vector<16x128xf32>
    %26 = arith.truncf %25 : vector<16x128xf32> to vector<16x128xbf16>
    %c0_14 = arith.constant 0 : index
    %c0_15 = arith.constant 0 : index
    %27 = vector.load %arg4[%c0_14, %c0_15] : memref<128x128xbf16, #tpu.memory_space<vmem>>, vector<128x128xbf16>
    %cst_16 = arith.constant dense<0.000000e+00> : vector<16x128xf32>
    %28 = tpu.matmul %26, %27, %cst_16 {dimension_numbers = #tpu.dot_dimension_numbers<[1], [0], [0], [1], [0, 0, 1, 1], [], []>} : vector<16x128xbf16>, vector<128x128xbf16>, vector<16x128xf32> -> vector<16x128xf32>
    %c0_17 = arith.constant 0 : index
    %c0_18 = arith.constant 0 : index
    %29 = vector.load %arg5[%c0_17, %c0_18] : memref<1x128xf32, #tpu.memory_space<vmem>>, vector<1x128xf32>
    %30 = vector.broadcast %29 : vector<1x128xf32> to vector<16x128xf32>
    %31 = arith.addf %28, %30 : vector<16x128xf32>
    %32 = math.tanh %31 : vector<16x128xf32>
    %33 = arith.truncf %32 : vector<16x128xf32> to vector<16x128xbf16>
    %c0_19 = arith.constant 0 : index
    %c0_20 = arith.constant 0 : index
    %34 = vector.load %arg6[%c0_19, %c0_20] : memref<128x128xbf16, #tpu.memory_space<vmem>>, vector<128x128xbf16>
    %cst_21 = arith.constant dense<0.000000e+00> : vector<16x128xf32>
    %35 = tpu.matmul %33, %34, %cst_21 {dimension_numbers = #tpu.dot_dimension_numbers<[1], [0], [0], [1], [0, 0, 1, 1], [], []>} : vector<16x128xbf16>, vector<128x128xbf16>, vector<16x128xf32> -> vector<16x128xf32>
    %c0_22 = arith.constant 0 : index
    %c0_23 = arith.constant 0 : index
    %36 = vector.load %arg7[%c0_22, %c0_23] : memref<1x128xf32, #tpu.memory_space<vmem>>, vector<1x128xf32>
    %37 = vector.broadcast %36 : vector<1x128xf32> to vector<16x128xf32>
    %38 = arith.addf %35, %37 : vector<16x128xf32>
    %c0_24 = arith.constant 0 : index
    %c0_25 = arith.constant 0 : index
    %39 = vector.load %arg8[%c0_24, %c0_25] : memref<16x128xf32, #tpu.memory_space<vmem>>, vector<16x128xf32>
    tpu.vector_store %arg8[%c0_24, %c0_25], %38 {strides = array<i32>} : memref<16x128xf32, #tpu.memory_space<vmem>>, vector<16x128xf32>,
    return
  }
  func.func @transform_0(%arg0: i32) -> (i32, i32) {
    %c0_i32 = arith.constant 0 : i32
    %c0_i32_0 = arith.constant 0 : i32
    return %arg0, %c0_i32 : i32, i32
  }
  func.func @transform_1(%arg0: i32) -> (i32, i32) {
    %c0_i32 = arith.constant 0 : i32
    %c0_i32_0 = arith.constant 0 : i32
    %c0_i32_1 = arith.constant 0 : i32
    return %c0_i32, %c0_i32_0 : i32, i32
  }
  func.func @transform_2(%arg0: i32) -> (i32, i32) {
    %c0_i32 = arith.constant 0 : i32
    %c0_i32_0 = arith.constant 0 : i32
    %c0_i32_1 = arith.constant 0 : i32
    return %c0_i32, %c0_i32_0 : i32, i32
  }
  func.func @transform_3(%arg0: i32) -> (i32, i32) {
    %c0_i32 = arith.constant 0 : i32
    %c0_i32_0 = arith.constant 0 : i32
    %c0_i32_1 = arith.constant 0 : i32
    return %c0_i32, %c0_i32_0 : i32, i32
  }
  func.func @transform_4(%arg0: i32) -> (i32, i32) {
    %c0_i32 = arith.constant 0 : i32
    %c0_i32_0 = arith.constant 0 : i32
    %c0_i32_1 = arith.constant 0 : i32
    return %c0_i32, %c0_i32_0 : i32, i32
  }
  func.func @transform_5(%arg0: i32) -> (i32, i32) {
    %c0_i32 = arith.constant 0 : i32
    %c0_i32_0 = arith.constant 0 : i32
    %c0_i32_1 = arith.constant 0 : i32
    return %c0_i32, %c0_i32_0 : i32, i32
  }
  func.func @transform_6(%arg0: i32) -> (i32, i32) {
    %c0_i32 = arith.constant 0 : i32
    %c0_i32_0 = arith.constant 0 : i32
    %c0_i32_1 = arith.constant 0 : i32
    return %c0_i32, %c0_i32_0 : i32, i32
  }
  func.func @transform_7(%arg0: i32) -> (i32, i32) {
    %c0_i32 = arith.constant 0 : i32
    %c0_i32_0 = arith.constant 0 : i32
    return %arg0, %c0_i32 : i32, i32
  }
}

</mosaic_0001>

<bundles_post_ra>
// kernel: tpu_custom_call.1
= control target key start
LH: loop header
LB: loop body
LE: loop exit
PB: predicated region body
PF: predicated region fallthrough
CT: control target
= control target key end

     0   :  { %12 = vsyncpa [#allocation3], 0  ;;  %s1063_s0 = inlined_call_operand.hbm [shape: bf16[16,128], index: 0, kind: input, shape index: {}]   ;;  %s1064_s1 = inlined_call_operand.hbm [shape: bf16[128,128], index: 1, kind: input, shape index: {}]   ;;  %s1065_s2 = inlined_call_operand.hbm [shape: bf16[128,128], index: 2, kind: input, shape index: {}]   ;;  %s1066_s3 = inlined_call_operand.hbm [shape: bf16[128,128], index: 3, kind: input, shape index: {}]   ;;  %s1067_s4 = inlined_call_operand.vmem [shape: f32[1,128], index: 4, kind: input, shape index: {}]   ;;  %s1068_s5 = inlined_call_operand.hbm [shape: bf16[128,128], index: 5, kind: input, shape index: {}]   ;;  %s1069_s6 = inlined_call_operand.vmem [shape: f32[1,128], index: 6, kind: input, shape index: {}]   ;;  %s1070_s7 = inlined_call_operand.hbm [shape: f32[16,128], index: 7, kind: output, shape index: {}]  }
   0x1   :  { %13 = vsyncpa [#allocation6], 0 }
   0x2   :  { %14 = vsyncpa [#allocation9], 0 }
   0x3   :  { %15 = vsyncpa [#allocation4], 0  ;;  %s932_s24 = smov [#allocation5]   ;;  %s933_s26 = smov [#allocation8]  }
   0x4   :  { %s33_s25 = sshll.u32 %s932_s24, 4  ;;  %s57_s27 = sshll.u32 %s933_s26, 4  ;;  %s34_s25 = int_to_ptr.vmem [resolvable:$true] %s33_s25  ;;  %s58_s27 = int_to_ptr.vmem [resolvable:$true] %s57_s27 }
   0x5   :  { %s812_s28 = scalar_lea.vmem %s34_s25, 1024  ;;  %p817_p1 = scmp.lt.s32.totalorder %s34_s25, %s34_s25 }
   0x6   :  { %p813_p0 = scmp.ne.s32.totalorder %s34_s25, %s812_s28  ;;  %p818_p2 = scmp.lt.s32.totalorder %s812_s28, %s812_s28 }
   0x8   :  { %p819_p3 = por %p818_p2, %p817_p1 }
   0xa   :  { %p820_p4 = pnand %p819_p3, %p813_p0 }
   0xc   :  { %823 = shalt.err (!%p820_p4)
}
   0xd   :  { %s934_s29 = smov 64   ;;  %s935_s30 = smov 4  }
   0xe   :  { %39 = dma.hbm_to_vmem [thread:$0]  %s1064_s1, 1024, %s34_s25, [#allocation6], %s934_s29, %s934_s29, %s935_s30  }
   0xf   :  { %s832_s10 = scalar_lea.vmem %s58_s27, 1024  ;;  %p837_p6 = scmp.lt.s32.totalorder %s58_s27, %s58_s27 }
  0x10   :  { %p833_p5 = scmp.ne.s32.totalorder %s58_s27, %s832_s10  ;;  %p838_p7 = scmp.lt.s32.totalorder %s832_s10, %s832_s10 }
  0x12   :  { %p839_p8 = por %p838_p7, %p837_p6 }
  0x14   :  { %p840_p9 = pnand %p839_p8, %p833_p5 }
  0x16   :  { %843 = shalt.err (!%p840_p9)
}
  0x17   :  { %63 = dma.hbm_to_vmem [thread:$0]  %s1066_s3, 1024, %s58_s27, [#allocation9], %s934_s29, %s934_s29, %s935_s30  }
  0x18   :  { %s936_s13 = smov [#allocation2]   ;;  %s937_s15 = smov [#allocation7]  }
  0x19   :  { %s21_s14 = sshll.u32 %s936_s13, 4  ;;  %s45_s16 = sshll.u32 %s937_s15, 4  ;;  %s22_s14 = int_to_ptr.vmem [resolvable:$true] %s21_s14  ;;  %s46_s16 = int_to_ptr.vmem [resolvable:$true] %s45_s16 }
  0x1a   :  { %s852_s1 = scalar_lea.vmem %s22_s14, 128  ;;  %p857_p11 = scmp.lt.s32.totalorder %s22_s14, %s22_s14 }
  0x1b   :  { %p853_p10 = scmp.ne.s32.totalorder %s22_s14, %s852_s1  ;;  %p858_p12 = scmp.lt.s32.totalorder %s852_s1, %s852_s1 }
  0x1d   :  { %p859_p13 = por %p858_p12, %p857_p11 }
  0x1f   :  { %p860_p0 = pnand %p859_p13, %p853_p10 }
  0x21   :  { %863 = shalt.err (!%p860_p0)
}
  0x22   :  { %27 = dma.hbm_to_vmem [thread:$0]  %s1063_s0, 128, %s22_s14, [#allocation3], %s934_s29, %s934_s29, %s935_s30  }
  0x23   :  { %s872_s3 = scalar_lea.vmem %s46_s16, 1024  ;;  %p877_p2 = scmp.lt.s32.totalorder %s46_s16, %s46_s16 }
  0x24   :  { %p873_p1 = scmp.ne.s32.totalorder %s46_s16, %s872_s3  ;;  %p878_p3 = scmp.lt.s32.totalorder %s872_s3, %s872_s3 }
  0x26   :  { %p879_p4 = por %p878_p3, %p877_p2 }
  0x28   :  { %p880_p5 = pnand %p879_p4, %p873_p1 }
  0x2a   :  { %883 = shalt.err (!%p880_p5)
}
  0x2b   :  { %51 = dma.hbm_to_vmem [thread:$0]  %s1065_s2, 1024, %s46_s16, [#allocation6], %s934_s29, %s934_s29, %s935_s30  }
  0x2c   :  { %s938_s21 = smov [#allocation10]  }
  0x2d   :  { %s71_s22 = sshll.u32 %s938_s21, 4  ;;  %s72_s22 = int_to_ptr.vmem [resolvable:$true] %s71_s22 }
  0x2e   :  { %s892_s23 = scalar_lea.vmem %s72_s22, 1024  ;;  %p897_p7 = scmp.lt.s32.totalorder %s72_s22, %s72_s22 }
  0x2f   :  { %p893_p6 = scmp.ne.s32.totalorder %s72_s22, %s892_s23  ;;  %p898_p8 = scmp.lt.s32.totalorder %s892_s23, %s892_s23 }
  0x31   :  { %p899_p9 = por %p898_p8, %p897_p7 }
  0x33   :  { %p900_p10 = pnand %p899_p9, %p893_p6 }
  0x35   :  { %903 = shalt.err (!%p900_p10)
}
  0x36   :  { %77 = dma.hbm_to_vmem [thread:$0]  %s1068_s5, 1024, %s72_s22, [#allocation9], %s934_s29, %s934_s29, %s935_s30  }
  0x37   :  { %924 = dma.done.wait [#allocation3], 128  }
  0x38   :  { %925 = vsyncadd [#allocation3], 4294967168 }
  0x39   :  { %926 = dma.done.wait [#allocation6], 2048  }
  0x3a   :  { %927 = vsyncadd [#allocation6], 4294965248 }
  0x3b   :  { %928 = dma.done.wait [#allocation9], 2048  }
  0x3c   :  { %929 = vsyncadd [#allocation9], 4294965248  ;;  %v939_v0 = vmov 0.0   ;;  %vm940_vm0 = vmmov 0   ;;  %v759_v1 = vld [vmem:[#allocation5 + $0x38] sm:$0xff]   ;;  %v760_v2 = vld [vmem:[#allocation5 + $0x30] sm:$0xff]  }
  0x3d   :  { %667 = vmatprep.subr.bf16.mxu0 %v939_v0  ;;  %683 = vmatprep.mubr.msk.bf16.mxu0 %vm940_vm0, %v939_v0  ;;  %v761_v3 = vld [vmem:[#allocation5 + $0x28] sm:$0xff]   ;;  %v762_v4 = vld [vmem:[#allocation5 + $0x20] sm:$0xff]   ;;  %v768_v5 = vld [vmem:[#allocation7 + $0x38] sm:$0xff]   ;;  %s941_s27 = smov [#allocation11]  }
  0x3e   :  { %687 = vmatprep.subr.bf16.mxu1 %v939_v0  ;;  %703 = vmatprep.mubr.msk.bf16.mxu1 %vm940_vm0, %v939_v0  ;;  %v763_v6 = vld [vmem:[#allocation5 + $0x18] sm:$0xff]   ;;  %v764_v7 = vld [vmem:[#allocation5 + $0x10] sm:$0xff]   ;;  %v765_v8 = vld [vmem:[#allocation5 + $0x8] sm:$0xff]  }
  0x3f   :  { %668 = vmatpush3.bf16.msra.mxu0 %v759_v1  ;;  %688 = vmatpush3.bf16.msra.mxu1 %v768_v5  ;;  %v766_v9 = vld [vmem:[#allocation5] sm:$0xff]   ;;  %v767_v10 = vld [vmem:[#allocation2] sm:$0xff]   ;;  %v769_v11 = vld [vmem:[#allocation7 + $0x30] sm:$0xff]  }
  0x40   :  { %669 = vmatprep.subr.bf16.mxu0 %v939_v0  ;;  %689 = vmatprep.subr.bf16.mxu1 %v939_v0  ;;  %v770_v12 = vld [vmem:[#allocation7 + $0x28] sm:$0xff]   ;;  %v771_v13 = vld [vmem:[#allocation7 + $0x20] sm:$0xff]   ;;  %v772_v14 = vld [vmem:[#allocation7 + $0x18] sm:$0xff]  }
  0x41   :  { %v773_v15 = vld [vmem:[#allocation7 + $0x10] sm:$0xff]   ;;  %v774_v16 = vld [vmem:[#allocation7 + $0x8] sm:$0xff]   ;;  %v775_v17 = vld [vmem:[#allocation7] sm:$0xff]  }
  0x42   :  { %v776_v18 = vld [vmem:[#allocation8 + $0x38] sm:$0xff]   ;;  %v777_v36 = vld [vmem:[#allocation8 + $0x30] sm:$0xff]   ;;  %v778_v37 = vld [vmem:[#allocation8 + $0x28] sm:$0xff]  }
  0x43   :  { %670 = vmatpush3.bf16.msra.mxu0 %v760_v2  ;;  %690 = vmatpush3.bf16.msra.mxu1 %v769_v11  ;;  %v779_v38 = vld [vmem:[#allocation8 + $0x20] sm:$0xff]   ;;  %v780_v39 = vld [vmem:[#allocation8 + $0x18] sm:$0xff]   ;;  %v781_v40 = vld [vmem:[#allocation8 + $0x10] sm:$0xff]  }
  0x44   :  { %671 = vmatprep.subr.bf16.mxu0 %v939_v0  ;;  %691 = vmatprep.subr.bf16.mxu1 %v939_v0  ;;  %v782_v41 = vld [vmem:[#allocation8 + $0x8] sm:$0xff]   ;;  %v783_v42 = vld [vmem:[#allocation8] sm:$0xff]   ;;  %v784_v43 = vld [vmem:[#allocation10 + $0x38] sm:$0xff]  }
  0x45   :  { %v785_v44 = vld [vmem:[#allocation10 + $0x30] sm:$0xff]   ;;  %v786_v62 = vld [vmem:[#allocation10 + $0x28] sm:$0xff]   ;;  %v787_v63 = vld [vmem:[#allocation10 + $0x20] sm:$0xff]  }
  0x46   :  { %v788_v1 = vld [vmem:[#allocation10 + $0x18] sm:$0xff]   ;;  %v789_v2 = vld [vmem:[#allocation10 + $0x10] sm:$0xff]  }
  0x47   :  { %672 = vmatpush3.bf16.msra.mxu0 %v761_v3  ;;  %692 = vmatpush3.bf16.msra.mxu1 %v770_v12  ;;  %v790_v3 = vld [vmem:[#allocation10 + $0x8] sm:$0xff]   ;;  %v613_v5 = vld [vmem:[%s1067_s4] ss:$0 sm:$0xff]  ;;  %s578_s4 = sshll.u32 %s941_s27, 4  ;;  %s579_s4 = int_to_ptr.vmem [resolvable:$true] %s578_s4 }
  0x48   :  { %673 = vmatprep.subr.bf16.mxu0 %v939_v0  ;;  %693 = vmatprep.subr.bf16.mxu1 %v939_v0  ;;  %s904_s28 = scalar_lea.vmem %s579_s4, 256  ;;  %p909_p12 = scmp.lt.s32.totalorder %s579_s4, %s579_s4 }
  0x49   :  { %p905_p11 = scmp.ne.s32.totalorder %s579_s4, %s904_s28  ;;  %p910_p13 = scmp.lt.s32.totalorder %s904_s28, %s904_s28 }
  0x4b   :  { %674 = vmatpush3.bf16.msra.mxu0 %v762_v4  ;;  %694 = vmatpush3.bf16.msra.mxu1 %v771_v13  ;;  %v791_v4 = vld [vmem:[#allocation10] sm:$0xff]   ;;  %p911_p0 = por %p910_p13, %p909_p12 }
  0x4c   :  { %675 = vmatprep.subr.bf16.mxu0 %v939_v0  ;;  %695 = vmatprep.subr.bf16.mxu1 %v939_v0 }
  0x4d   :  { %p912_p1 = pnand %p911_p0, %p905_p11 }
  0x4f   :  { %676 = vmatpush3.bf16.msra.mxu0 %v763_v6  ;;  %696 = vmatpush3.bf16.msra.mxu1 %v772_v14 }
  0x50   :  { %677 = vmatprep.subr.bf16.mxu0 %v939_v0  ;;  %697 = vmatprep.subr.bf16.mxu1 %v939_v0 }
  0x53   :  { %678 = vmatpush3.bf16.msra.mxu0 %v764_v7  ;;  %698 = vmatpush3.bf16.msra.mxu1 %v773_v15 }
  0x54   :  { %679 = vmatprep.subr.bf16.mxu0 %v939_v0  ;;  %699 = vmatprep.subr.bf16.mxu1 %v939_v0 }
  0x57   :  { %680 = vmatpush3.bf16.msra.mxu0 %v765_v8  ;;  %700 = vmatpush3.bf16.msra.mxu1 %v774_v16 }
  0x58   :  { %681 = vmatprep.subr.bf16.mxu0 %v939_v0  ;;  %701 = vmatprep.subr.bf16.mxu1 %v939_v0 }
  0x5b   :  { %682 = vmatpush3.bf16.msra.mxu0 %v766_v9  ;;  %702 = vmatpush3.bf16.msra.mxu1 %v775_v17 }
  0x5c   :  { %707 = vmatprep.subr.bf16.mxu0 %v939_v0  ;;  %727 = vmatprep.subr.bf16.mxu1 %v939_v0 }
  0x5e   :  { %684 = vmatmul.mubr.bf16.vlgmr.msra.gmra.mxu0 %v767_v10 }
  0x5f   :  { %723 = vmatprep.mubr.msk.bf16.mxu0 %vm940_vm0, %v939_v0  ;;  %708 = vmatpush3.bf16.msra.mxu0 %v776_v18 }
  0x60   :  { %709 = vmatprep.subr.bf16.mxu0 %v939_v0 }
  0x63   :  { %710 = vmatpush3.bf16.msra.mxu0 %v777_v36 }
  0x64   :  { %711 = vmatprep.subr.bf16.mxu0 %v939_v0 }
  0x67   :  { %712 = vmatpush3.bf16.msra.mxu0 %v778_v37 }
  0x68   :  { %713 = vmatprep.subr.bf16.mxu0 %v939_v0 }
  0x6b   :  { %714 = vmatpush3.bf16.msra.mxu0 %v779_v38 }
  0x6c   :  { %715 = vmatprep.subr.bf16.mxu0 %v939_v0 }
  0x6f   :  { %716 = vmatpush3.bf16.msra.mxu0 %v780_v39 }
  0x70   :  { %717 = vmatprep.subr.bf16.mxu0 %v939_v0 }
  0x73   :  { %718 = vmatpush3.bf16.msra.mxu0 %v781_v40 }
  0x74   :  { %719 = vmatprep.subr.bf16.mxu0 %v939_v0 }
  0x77   :  { %720 = vmatpush3.bf16.msra.mxu0 %v782_v41 }
  0x78   :  { %721 = vmatprep.subr.bf16.mxu0 %v939_v0 }
  0x7b   :  { %722 = vmatpush3.bf16.msra.mxu0 %v783_v42 }
 0x11e   :  { %v202_v19 = vpop.f32.mrf.mxu0 }
 0x11f   :  { %v211_v20 = vmul.f32 1.442695, %v202_v19  ;;  %vm209_vm1 = vcmp.gt.f32.partialorder %v202_v19, 0.0 }
 0x120   :  { %v685_v21 = vpop.f32.mrf.mxu0 }
 0x121   :  { %792 = vpow2.f32 %v211_v20 }
 0x122   :  { %v205_v22 = vpop.f32.mrf.mxu0 }
 0x123   :  { %v213_v23 = vmul.f32 1.442695, %v205_v22  ;;  %vm210_vm2 = vcmp.gt.f32.partialorder %v205_v22, 0.0 }
 0x124   :  { %v686_v24 = vpop.f32.mrf.mxu0 }
 0x125   :  { %794 = vpow2.f32 %v213_v23 }
 0x12e   :  { %v793_v25 = vpop.eup %792 }
 0x12f   :  { %v601_v26 = vadd.f32 -1.0, %v793_v25 }
 0x131   :  { %v217_v27 = vmul.f32 1.6732632, %v601_v26 }
 0x132   :  { %v795_v28 = vpop.eup %794 }
 0x133   :  { %v602_v29 = vadd.f32 -1.0, %v795_v28  ;;  %v219_v30 = vsel %vm209_vm1, %v202_v19, %v217_v27 }
 0x134   :  { %v221_v33 = vmul.f32 1.050701, %v219_v30 }
 0x135   :  { %v218_v31 = vmul.f32 1.6732632, %v602_v29 }
 0x137   :  { %v220_v32 = vsel %vm210_vm2, %v205_v22, %v218_v31 }
 0x138   :  { %v222_v34 = vmul.f32 1.050701, %v220_v32 }
 0x13a   :  { %v223_v35 = vpack.c.bf16 %v222_v34, %v221_v33 }
 0x13c   :  { %704 = vmatmul.mubr.bf16.vlgmr.msra.gmra.mxu1 %v223_v35 }
 0x13d   :  { %743 = vmatprep.mubr.msk.bf16.mxu1 %vm940_vm0, %v939_v0  ;;  %728 = vmatpush3.bf16.msra.mxu1 %v784_v43 }
 0x13e   :  { %729 = vmatprep.subr.bf16.mxu1 %v939_v0 }
 0x141   :  { %730 = vmatpush3.bf16.msra.mxu1 %v785_v44 }
 0x142   :  { %731 = vmatprep.subr.bf16.mxu1 %v939_v0 }
 0x145   :  { %732 = vmatpush3.bf16.msra.mxu1 %v786_v62 }
 0x146   :  { %733 = vmatprep.subr.bf16.mxu1 %v939_v0 }
 0x149   :  { %734 = vmatpush3.bf16.msra.mxu1 %v787_v63 }
 0x14a   :  { %735 = vmatprep.subr.bf16.mxu1 %v939_v0 }
 0x14d   :  { %736 = vmatpush3.bf16.msra.mxu1 %v788_v1 }
 0x14e   :  { %737 = vmatprep.subr.bf16.mxu1 %v939_v0 }
 0x151   :  { %738 = vmatpush3.bf16.msra.mxu1 %v789_v2 }
 0x152   :  { %739 = vmatprep.subr.bf16.mxu1 %v939_v0 }
 0x155   :  { %740 = vmatpush3.bf16.msra.mxu1 %v790_v3 }
 0x156   :  { %741 = vmatprep.subr.bf16.mxu1 %v939_v0  ;;  %v622_v0 = vld [vmem:[%s1069_s6] ss:$0 sm:$0xff] }
 0x159   :  { %742 = vmatpush3.bf16.msra.mxu1 %v791_v4 }
 0x1fc   :  { %v322_v45 = vpop.f32.mrf.mxu1 }
 0x1fd   :  { %v331_v46 = vmul.f32 1.442695, %v322_v45  ;;  %vm329_vm3 = vcmp.gt.f32.partialorder %v322_v45, 0.0 }
 0x1fe   :  { %v705_v47 = vpop.f32.mrf.mxu1 }
 0x1ff   :  { %796 = vpow2.f32 %v331_v46 }
 0x200   :  { %v325_v48 = vpop.f32.mrf.mxu1 }
 0x201   :  { %v333_v49 = vmul.f32 1.442695, %v325_v48  ;;  %vm330_vm4 = vcmp.gt.f32.partialorder %v325_v48, 0.0 }
 0x202   :  { %v706_v50 = vpop.f32.mrf.mxu1 }
 0x203   :  { %798 = vpow2.f32 %v333_v49 }
 0x20c   :  { %v797_v51 = vpop.eup %796 }
 0x20d   :  { %v611_v52 = vadd.f32 -1.0, %v797_v51 }
 0x20f   :  { %v337_v53 = vmul.f32 1.6732632, %v611_v52 }
 0x210   :  { %v799_v54 = vpop.eup %798 }
 0x211   :  { %v612_v55 = vadd.f32 -1.0, %v799_v54  ;;  %v339_v56 = vsel %vm329_vm3, %v322_v45, %v337_v53 }
 0x212   :  { %v341_v59 = vmul.f32 1.050701, %v339_v56 }
 0x213   :  { %v338_v57 = vmul.f32 1.6732632, %v612_v55 }
 0x215   :  { %v340_v58 = vsel %vm330_vm4, %v325_v48, %v338_v57 }
 0x216   :  { %v342_v60 = vmul.f32 1.050701, %v340_v58 }
 0x218   :  { %v343_v61 = vpack.c.bf16 %v342_v60, %v341_v59 }
 0x21a   :  { %724 = vmatmul.mubr.bf16.vlgmr.msra.gmra.mxu0 %v343_v61 }
 0x2da   :  { %v449_v6 = vpop.f32.mrf.mxu0 }
 0x2db   :  { %v450_v7 = vadd.f32 %v613_v5, %v449_v6 }
 0x2dc   :  { %v725_v8 = vpop.f32.mrf.mxu0 }
 0x2dd   :  { %800 = vtanh.f32 %v450_v7 }
 0x2de   :  { %v452_v9 = vpop.f32.mrf.mxu0 }
 0x2df   :  { %v453_v10 = vadd.f32 %v613_v5, %v452_v9 }
 0x2e0   :  { %v726_v11 = vpop.f32.mrf.mxu0 }
 0x2e1   :  { %802 = vtanh.f32 %v453_v10 }
 0x2ea   :  { %v801_v12 = vpop.eup %800 }
 0x2ee   :  { %v803_v13 = vpop.eup %802 }
 0x2ef   :  { %v458_v14 = vpack.c.bf16 %v803_v13, %v801_v12 }
 0x2f1   :  { %744 = vmatmul.mubr.bf16.vlgmr.msra.gmra.mxu1 %v458_v14 }
 0x3b1   :  { %v564_v15 = vpop.f32.mrf.mxu1 }
 0x3b2   :  { %v565_v16 = vadd.f32 %v622_v0, %v564_v15 }
 0x3b3   :  { %v745_v17 = vpop.f32.mrf.mxu1 }
 0x3b4   :  { %571 = vst [vmem:[#allocation11] sm:$0xff] %v565_v16 }
 0x3b5   :  { %v567_v18 = vpop.f32.mrf.mxu1 }
 0x3b6   :  { %v568_v19 = vadd.f32 %v622_v0, %v567_v18 }
 0x3b7   :  { %v746_v20 = vpop.f32.mrf.mxu1 }
 0x3b8   :  { %572 = vst [vmem:[#allocation11 + $0x8] sm:$0xff] %v568_v19 }
 0x3b9   :  { %915 = shalt.err (!%p912_p1)
}
 0x3ba   :  { %s942_s29 = smov 128   ;;  %s943_s6 = smov 8  }
 0x3bb   :  { %584 = dma.vmem_to_hbm [thread:$0]  %s579_s4, 256, %s1070_s7, [#allocation4], %s942_s29, %s942_s29, %s943_s6  }
 0x3bc   :  { %930 = dma.done.wait [#allocation4], 256  }
 0x3bd   :  { %931 = vsyncadd [#allocation4], 4294967040 }
 0x3be   :  { %588 = vsyncpa [#allocation3], 1 }
 0x3bf   :  { %589 = vsyncpa [#allocation6], 1 }
 0x3c0   :  { %590 = vsyncpa [#allocation9], 1 }
 0x3c1   :  { %591 = vsyncpa [#allocation4], 1 }

</bundles_post_ra>
